<compile_context>
chip_gen: v7x
topology: tpu7x:2x2x1
jax: 0.10.0
libtpu: 0.0.40
codegen_flags: <defaults>
</compile_context>

<pallas_src>
import functools

import jax
import jax.numpy as jnp
from jax.experimental import pallas as pl
from jax.experimental.pallas import tpu as pltpu

_LANE = 128
_SUBLANE = 8


def _round_up(x, m):
    return (x + m - 1) // m * m


def _postag_head_kernel(x_ref, dw_ref, db_ref, decw_ref, decb_ref, o_ref, *,
                        eps, approximate_gelu):
    # x_ref: (tm, H) block of flattened features.
    dw = dw_ref[...]                       # [H, H] in matmul dtype (bf16/f32)
    x = x_ref[...].astype(dw.dtype)        # no-op if features already match

    # dense: x @ W_d^T + b_d (weight pre-transposed in wrapper), f32 accumulate
    h = jnp.dot(x, dw, preferred_element_type=jnp.float32)
    h = h + db_ref[...]

    if approximate_gelu:
        # tanh-form GELU: most of the work goes to the EUP slot (v5e win).
        c = jnp.float32(0.7978845608028654)   # sqrt(2/pi)
        h = 0.5 * h * (1.0 + jnp.tanh(c * (h + 0.044715 * h * h * h)))
    else:
        # exact (erf) GELU — matches transformers' gelu
        h = 0.5 * h * (1.0 + jax.lax.erf(h * jnp.float32(0.7071067811865476)))

    # LayerNorm over hidden dim; gamma/beta are folded into the decoder
    # weight/bias in the wrapper, so only the normalization happens here.
    mean = jnp.mean(h, axis=-1, keepdims=True)
    centered = h - mean
    var = jnp.mean(centered * centered, axis=-1, keepdims=True)
    h = centered * jax.lax.rsqrt(var + eps)

    # decoder (gamma folded in) + (beta-folded bias + head bias); output
    # columns zero-padded to 128 lanes for unmasked lane-dense stores.
    decw = decw_ref[...]                   # [H, 128]
    out = jnp.dot(h.astype(decw.dtype), decw,
                  preferred_element_type=jnp.float32)
    out = out + decb_ref[...]

    o_ref[...] = out.astype(o_ref.dtype)


def roberta_postag_head(features, params, *, eps=1e-5, tm=512,
                        weight_dtype=jnp.bfloat16, approximate_gelu=False):
    """features: [B, S, H] -> logits [B, S, 5]."""
    B, S, H = features.shape
    M = B * S
    n_out = params["decoder_w"].shape[0]   # 5

    # Row padding only up to a sublane multiple; balanced tiles; >= 2 grid
    # steps whenever M permits so the v7x megacore can shard the parallel axis.
    M8 = _round_up(M, _SUBLANE)
    min_steps = 2 if M8 >= 2 * _SUBLANE else 1
    n_tiles = max(pl.cdiv(M8, tm), min_steps)
    tm_eff = _round_up(pl.cdiv(M8, n_tiles), _SUBLANE)
    n_tiles = pl.cdiv(M8, tm_eff)
    M_pad = n_tiles * tm_eff

    x2d = features.reshape(M, H)
    if M_pad != M:
        # Zero-padded rows pass through LN with var=0 -> rsqrt(eps)-scaled but
        # finite values; they are sliced off below, so this is safe.
        x2d = jnp.pad(x2d, ((0, M_pad - M), (0, 0)))

    # Default bf16 for full-rate MXU on v5e/v6e/v7x; f32 path kept for parity.
    w_dt = jnp.dtype(weight_dtype)

    # PyTorch nn.Linear weights are [out, in]; pre-transpose to [in, out].
    dense_w_t = params["dense_w"].T.astype(w_dt)                 # [H, H]
    dense_b = params["dense_b"].reshape(1, H).astype(jnp.float32)

    # Fold LayerNorm affine into the decoder (exact in real arithmetic):
    #   (x_norm * g + b) @ W^T + bias = x_norm @ (g[:,None] * W^T) + (b @ W^T + bias)
    gamma = params["ln_gamma"].astype(jnp.float32)               # [H]
    beta = params["ln_beta"].astype(jnp.float32)                 # [H]
    dec_w = params["decoder_w"].astype(jnp.float32)              # [n_out, H]
    dec_w_t_folded = gamma[:, None] * dec_w.T                    # [H, n_out]
    dec_b_folded = beta @ dec_w.T + params["bias"].astype(jnp.float32)

    # Lane-dense decoder: zero-pad the n_out output columns up to 128 lanes.
    n_pad = _round_up(n_out, _LANE)
    dec_w_t = jnp.zeros((H, n_pad), w_dt).at[:, :n_out].set(
        dec_w_t_folded.astype(w_dt))                             # [H, 128]
    dec_b = jnp.zeros((1, n_pad), jnp.float32).at[:, :n_out].set(
        dec_b_folded)                                            # [1, 128]

    kernel = functools.partial(_postag_head_kernel, eps=float(eps),
                               approximate_gelu=bool(approximate_gelu))

    def _const_spec(shape):
        # Grid-invariant operand: loaded once, single-buffered (no 2nd buffer).
        return pl.BlockSpec(shape, lambda i: (0, 0),
                            pipeline_mode=pl.Buffered(1))

    out2d = pl.pallas_call(
        kernel,
        out_shape=jax.ShapeDtypeStruct((M_pad, n_pad), features.dtype),
        grid_spec=pltpu.PrefetchScalarGridSpec(
            num_scalar_prefetch=0,
            grid=(n_tiles,),
            in_specs=[
                pl.BlockSpec((tm_eff, H), lambda i: (i, 0)),  # x rows (pipelined)
                _const_spec((H, H)),                          # dense W^T
                _const_spec((1, H)),                          # dense b
                _const_spec((H, n_pad)),                      # decoder W^T (folded, padded)
                _const_spec((1, n_pad)),                      # folded bias (padded)
            ],
            out_specs=pl.BlockSpec((tm_eff, n_pad), lambda i: (i, 0)),
        ),
        compiler_params=pltpu.CompilerParams(
            dimension_semantics=("parallel",),
            vmem_limit_bytes=32 * 1024 * 1024),
    )(x2d, dense_w_t, dense_b, dec_w_t, dec_b)

    return out2d[:M, :n_out].reshape(B, S, n_out)


def init_params(key, hidden_size):
    ks = jax.random.split(key, 4)
    scale = 0.02
    return {
        "dense_w": scale * jax.random.normal(ks[0], (hidden_size, hidden_size),
                                             jnp.float32),
        "dense_b": scale * jax.random.normal(ks[1], (hidden_size,), jnp.float32),
        "ln_gamma": jnp.ones((hidden_size,), jnp.float32),
        "ln_beta": jnp.zeros((hidden_size,), jnp.float32),
        "decoder_w": scale * jax.random.normal(ks[2], (5, hidden_size),
                                               jnp.float32),
        "bias": jnp.zeros((5,), jnp.float32),
    }


def _reference(features, params, eps=1e-5):
    # pure-JAX reference for sanity checking
    x = features @ params["dense_w"].T + params["dense_b"]
    x = 0.5 * x * (1.0 + jax.lax.erf(x / jnp.sqrt(2.0)))
    mu = jnp.mean(x, axis=-1, keepdims=True)
    var = jnp.mean((x - mu) ** 2, axis=-1, keepdims=True)
    x = (x - mu) / jnp.sqrt(var + eps) * params["ln_gamma"] + params["ln_beta"]
    return x @ params["decoder_w"].T + params["bias"]


if __name__ == "__main__":
    key = jax.random.PRNGKey(0)
    k_x, k_p = jax.random.split(key)

    B, S, H = 2, 8, 32
    features = jax.random.normal(k_x, (B, S, H), jnp.float32)
    params = init_params(k_p, H)

    ref = _reference(features, params, eps=1e-5)

    # Default path: bf16 MXU dtype, f32 accumulation -> loose tolerance.
    out = roberta_postag_head(features, params, eps=1e-5)
    out = jax.block_until_ready(out)
    assert out.shape == (B, S, 5)
    assert jnp.allclose(out, ref, atol=3e-2, rtol=3e-2), \
        "bf16 (default) mismatch vs reference"

    # f32 weight path: strict numerical check against the reference.
    out_f32 = roberta_postag_head(features, params, eps=1e-5,
                                  weight_dtype=jnp.float32)
    out_f32 = jax.block_until_ready(out_f32)
    assert jnp.allclose(out_f32, ref, atol=1e-4, rtol=1e-4), \
        "f32 mismatch vs reference"

    # Optional tanh-approximate GELU path (v5e VALU relief) — loose tolerance.
    out_tanh = roberta_postag_head(features, params, eps=1e-5,
                                   approximate_gelu=True)
    out_tanh = jax.block_until_ready(out_tanh)
    assert jnp.allclose(out_tanh, ref, atol=3e-2, rtol=3e-2), \
        "tanh-GELU mismatch vs reference"

    print("KERNEL_OK")
</pallas_src>

<mosaic_0001>
module attributes {stable_mosaic.version = 11 : i64} {
  func.func @_postag_head_kernel(%arg0: i32, %arg1: memref<8x32xf32, #tpu.memory_space<vmem>>, %arg2: memref<32x32xbf16, #tpu.memory_space<vmem>>, %arg3: memref<1x32xf32, #tpu.memory_space<vmem>>, %arg4: memref<32x128xbf16, #tpu.memory_space<vmem>>, %arg5: memref<1x128xf32, #tpu.memory_space<vmem>>, %arg6: memref<8x128xf32, #tpu.memory_space<vmem>>) attributes {dimension_semantics = [#tpu.dimension_semantics<parallel>], iteration_bounds = array<i64: 2>, scalar_prefetch = 0 : i64, scratch_operands = 0 : i64, tpu.core_type = #tpu.core_type<tc>, window_params = [{transform_indices = @transform_0, window_bounds = array<i64: 8, 32>}, {pipeline_mode = #tpu.pipeline_mode<synchronous>, transform_indices = @transform_1, window_bounds = array<i64: 32, 32>}, {pipeline_mode = #tpu.pipeline_mode<synchronous>, transform_indices = @transform_2, window_bounds = array<i64: 1, 32>}, {pipeline_mode = #tpu.pipeline_mode<synchronous>, transform_indices = @transform_3, window_bounds = array<i64: 32, 128>}, {pipeline_mode = #tpu.pipeline_mode<synchronous>, transform_indices = @transform_4, window_bounds = array<i64: 1, 128>}, {transform_indices = @transform_5, window_bounds = array<i64: 8, 128>}]} {
    %c0 = arith.constant 0 : index
    %c0_0 = arith.constant 0 : index
    %0 = vector.load %arg2[%c0, %c0_0] : memref<32x32xbf16, #tpu.memory_space<vmem>>, vector<32x32xbf16>
    %c0_1 = arith.constant 0 : index
    %c0_2 = arith.constant 0 : index
    %1 = vector.load %arg1[%c0_1, %c0_2] : memref<8x32xf32, #tpu.memory_space<vmem>>, vector<8x32xf32>
    %2 = arith.truncf %1 : vector<8x32xf32> to vector<8x32xbf16>
    %cst = arith.constant dense<0.000000e+00> : vector<8x32xf32>
    %3 = tpu.matmul %2, %0, %cst {dimension_numbers = #tpu.dot_dimension_numbers<[1], [0], [0], [1], [0, 0, 1, 1], [], []>} : vector<8x32xbf16>, vector<32x32xbf16>, vector<8x32xf32> -> vector<8x32xf32>
    %c0_3 = arith.constant 0 : index
    %c0_4 = arith.constant 0 : index
    %4 = vector.load %arg3[%c0_3, %c0_4] : memref<1x32xf32, #tpu.memory_space<vmem>>, vector<1x32xf32>
    %5 = vector.broadcast %4 : vector<1x32xf32> to vector<8x32xf32>
    %6 = arith.addf %3, %5 : vector<8x32xf32>
    %cst_5 = arith.constant 5.000000e-01 : f32
    %7 = vector.broadcast %cst_5 : f32 to vector<8x32xf32>
    %8 = arith.mulf %7, %6 : vector<8x32xf32>
    %cst_6 = arith.constant 0.707106769 : f32
    %9 = vector.broadcast %cst_6 : f32 to vector<8x32xf32>
    %10 = arith.mulf %6, %9 : vector<8x32xf32>
    %11 = math.erf %10 : vector<8x32xf32>
    %cst_7 = arith.constant 1.000000e+00 : f32
    %12 = vector.broadcast %cst_7 : f32 to vector<8x32xf32>
    %13 = arith.addf %12, %11 : vector<8x32xf32>
    %14 = arith.mulf %8, %13 : vector<8x32xf32>
    %cst_8 = arith.constant dense<0.000000e+00> : vector<8xf32>
    %15 = vector.multi_reduction <add>, %14, %cst_8 [1] : vector<8x32xf32> to vector<8xf32>
    %16 = vector.shape_cast %15 : vector<8xf32> to vector<8x1xf32>
    %cst_9 = arith.constant 3.200000e+01 : f32
    %17 = vector.broadcast %cst_9 : f32 to vector<8x1xf32>
    %18 = arith.divf %16, %17 : vector<8x1xf32>
    %19 = vector.broadcast %18 : vector<8x1xf32> to vector<8x32xf32>
    %20 = arith.subf %14, %19 : vector<8x32xf32>
    %21 = arith.mulf %20, %20 : vector<8x32xf32>
    %cst_10 = arith.constant dense<0.000000e+00> : vector<8xf32>
    %22 = vector.multi_reduction <add>, %21, %cst_10 [1] : vector<8x32xf32> to vector<8xf32>
    %23 = vector.shape_cast %22 : vector<8xf32> to vector<8x1xf32>
    %cst_11 = arith.constant 3.200000e+01 : f32
    %24 = vector.broadcast %cst_11 : f32 to vector<8x1xf32>
    %25 = arith.divf %23, %24 : vector<8x1xf32>
    %cst_12 = arith.constant 9.99999974E-6 : f32
    %26 = vector.broadcast %cst_12 : f32 to vector<8x1xf32>
    %27 = arith.addf %25, %26 : vector<8x1xf32>
    %28 = math.rsqrt %27 : vector<8x1xf32>
    %29 = vector.broadcast %28 : vector<8x1xf32> to vector<8x32xf32>
    %30 = arith.mulf %20, %29 : vector<8x32xf32>
    %c0_13 = arith.constant 0 : index
    %c0_14 = arith.constant 0 : index
    %31 = vector.load %arg4[%c0_13, %c0_14] : memref<32x128xbf16, #tpu.memory_space<vmem>>, vector<32x128xbf16>
    %32 = arith.truncf %30 : vector<8x32xf32> to vector<8x32xbf16>
    %cst_15 = arith.constant dense<0.000000e+00> : vector<8x128xf32>
    %33 = tpu.matmul %32, %31, %cst_15 {dimension_numbers = #tpu.dot_dimension_numbers<[1], [0], [0], [1], [0, 0, 1, 1], [], []>} : vector<8x32xbf16>, vector<32x128xbf16>, vector<8x128xf32> -> vector<8x128xf32>
    %c0_16 = arith.constant 0 : index
    %c0_17 = arith.constant 0 : index
    %34 = vector.load %arg5[%c0_16, %c0_17] : memref<1x128xf32, #tpu.memory_space<vmem>>, vector<1x128xf32>
    %35 = vector.broadcast %34 : vector<1x128xf32> to vector<8x128xf32>
    %36 = arith.addf %33, %35 : vector<8x128xf32>
    %c0_18 = arith.constant 0 : index
    %c0_19 = arith.constant 0 : index
    %37 = vector.load %arg6[%c0_18, %c0_19] : memref<8x128xf32, #tpu.memory_space<vmem>>, vector<8x128xf32>
    tpu.vector_store %arg6[%c0_18, %c0_19], %36 {strides = array<i32>} : memref<8x128xf32, #tpu.memory_space<vmem>>, vector<8x128xf32>,
    return
  }
  func.func @transform_0(%arg0: i32) -> (i32, i32) {
    %c0_i32 = arith.constant 0 : i32
    %c0_i32_0 = arith.constant 0 : i32
    return %arg0, %c0_i32 : i32, i32
  }
  func.func @transform_1(%arg0: i32) -> (i32, i32) {
    %c0_i32 = arith.constant 0 : i32
    %c0_i32_0 = arith.constant 0 : i32
    %c0_i32_1 = arith.constant 0 : i32
    return %c0_i32, %c0_i32_0 : i32, i32
  }
  func.func @transform_2(%arg0: i32) -> (i32, i32) {
    %c0_i32 = arith.constant 0 : i32
    %c0_i32_0 = arith.constant 0 : i32
    %c0_i32_1 = arith.constant 0 : i32
    return %c0_i32, %c0_i32_0 : i32, i32
  }
  func.func @transform_3(%arg0: i32) -> (i32, i32) {
    %c0_i32 = arith.constant 0 : i32
    %c0_i32_0 = arith.constant 0 : i32
    %c0_i32_1 = arith.constant 0 : i32
    return %c0_i32, %c0_i32_0 : i32, i32
  }
  func.func @transform_4(%arg0: i32) -> (i32, i32) {
    %c0_i32 = arith.constant 0 : i32
    %c0_i32_0 = arith.constant 0 : i32
    %c0_i32_1 = arith.constant 0 : i32
    return %c0_i32, %c0_i32_0 : i32, i32
  }
  func.func @transform_5(%arg0: i32) -> (i32, i32) {
    %c0_i32 = arith.constant 0 : i32
    %c0_i32_0 = arith.constant 0 : i32
    return %arg0, %c0_i32 : i32, i32
  }
}

</mosaic_0001>

<bundles_post_ra>
// kernel: tpu_custom_call.1
= control target key start
LH: loop header
LB: loop body
LE: loop exit
PB: predicated region body
PF: predicated region fallthrough
CT: control target
= control target key end

     0   :  { %10 = vsyncpa [#allocation3], 0  ;;  %s1093_s0 = inlined_call_operand.hbm [shape: f32[16,32], index: 0, kind: input, shape index: {}]   ;;  %s1094_s1 = inlined_call_operand.hbm [shape: bf16[32,32], index: 1, kind: input, shape index: {}]   ;;  %s1095_s2 = inlined_call_operand.vmem [shape: f32[1,32], index: 2, kind: input, shape index: {}]   ;;  %s1096_s3 = inlined_call_operand.hbm [shape: bf16[32,128], index: 3, kind: input, shape index: {}]   ;;  %s1097_s4 = inlined_call_operand.vmem [shape: f32[1,128], index: 4, kind: input, shape index: {}]   ;;  %s1098_s5 = inlined_call_operand.hbm [shape: f32[16,128], index: 5, kind: output, shape index: {}]  }
   0x1   :  { %12 = vsyncpa [#allocation3 + $0x1], 0 }
   0x2   :  { %13 = vsyncpa [#allocation6], 0 }
   0x3   :  { %14 = vsyncpa [#allocation4], 0 }
   0x4   :  { %16 = vsyncpa [#allocation4 + $0x1], 0  ;;  %s850_s18 = smov 0   ;;  %s852_s19 = smov 0  }
   0x5   :  { %s854_s20 = smov 0   ;;  %s856_s21 = smov 0  }
   0x6 LB: > { %s871_s22 = sadd.s32 4294967295, %s810_s21   ;;  %s529_s23 = sadd.s32 4294967294, %s810_s21   ;;  %s810_s21 = sphi %s856_s21, %s1118_s21   ;;  %s806_s20 = sphi %s854_s20, %s1117_s20   ;;  %s802_s19 = sphi %s852_s19, %s1116_s19   ;;  %s798_s18 = sphi %s850_s18, %s1115_s18  }
   0x7   : > { %p42_p0 = scmp.ne.s32.totalorder %s802_s19, %s798_s18  ;;  %p1099_p1 = scmp.eq.s32.totalorder %s871_s22, 0 }
   0x8   : > { %p156_p3 = scmp.eq.s32.totalorder %s529_s23, 1  ;;  %p530_p5 = scmp.ge.s32.totalorder %s810_s21, 1 }
   0x9   : > { %p880_p4 = por %p1099_p1, %p42_p0  ;;  %p163_p7 = scmp.lt.s32.totalorder %s810_s21, 3 }
   0xa   : > { %p885_p6 = por %p156_p3, %p42_p0  ;;  %s812_s27 = smov [#allocation5]  }
   0xb   : > { %s1102_s24 = scalar_select %p880_p4, 1, 0 }
   0xc   : > { %s1103_s25 = scalar_select %p885_p6, 1, 0 }
   0xd   : > { %p890_p8 = pnand %p530_p5, %p163_p7  ;;  %s175_s28 = sshll.u32 %s812_s27, 4  ;;  %s894_s28 = int_to_ptr.vmem [resolvable:$true] %s175_s28 }
   0xe   : > { %s813_s30 = smov [#allocation7]   ;;  %s654_s9 = scalar_lea.hbm %s1094_s1, 256 }
   0xf   : > { %p587_p9 = pneg %p890_p8  ;;  %s191_s6 = sshll.u32 %s813_s30, 4  ;;  %s905_s6 = int_to_ptr.vmem [resolvable:$true] %s191_s6 }
  0x10   : > { %p655_p12 = scmp.ne.s32.totalorder %s1094_s1, %s654_s9  ;;  %p661_p5 = scmp.lt.u32.totalorder %s654_s9, %s1094_s1 }
  0x11   : > { %p901_p11 = pnand %p587_p9, %p1099_p1 }
  0x13   : > { %p656_p13 = pneg %p901_p11 }
  0x15   : > { %p657_p0 = pnand %p656_p13, %p655_p12 }
  0x17   : > { %p658_p3 = pneg %p657_p0 }
  0x19   : > { %p663_p7 = pnand %p661_p5, %p658_p3 }
  0x1b   : > { %666 = shalt.err (!%p663_p7)
}
  0x1c   : > { %s667_s14 = scalar_lea.vmem %s894_s28, 256  ;;  %p675_p2 = scmp.lt.s32.totalorder %s894_s28, %s894_s28 }
  0x1d   : > { %p668_p9 = scmp.ne.s32.totalorder %s894_s28, %s667_s14  ;;  %p676_p12 = scmp.lt.s32.totalorder %s667_s14, %s667_s14 }
  0x1f   : > { %p670_p10 = pnand %p668_p9, %p656_p13  ;;  %p677_p0 = por %p676_p12, %p675_p2 }
  0x21   : > { %p671_p1 = pneg %p670_p10 }
  0x23   : > { %p678_p6 = pnand %p677_p0, %p671_p1 }
  0x25   : > { %681 = shalt.err (!%p678_p6)
}
  0x26   : > { %s814_s15 = smov 64   ;;  %s815_s16 = smov 4  }
  0x27   : > { %590 = dma.hbm_to_vmem [thread:$0]  (!%p901_p11), %s1094_s1, 256, %s894_s28, [#allocation6], %s814_s15, %s814_s15, %s815_s16  }
  0x28   : > { %s682_s7 = scalar_lea.hbm %s1096_s3, 256 }
  0x29   : > { %p683_p2 = scmp.ne.s32.totalorder %s1096_s3, %s682_s7  ;;  %p689_p10 = scmp.lt.u32.totalorder %s682_s7, %s1096_s3 }
  0x2b   : > { %p685_p1 = pnand %p683_p2, %p656_p13 }
  0x2d   : > { %p686_p6 = pneg %p685_p1 }
  0x2f   : > { %p691_p3 = pnand %p689_p10, %p686_p6 }
  0x31   : > { %694 = shalt.err (!%p691_p3)
}
  0x32   : > { %s695_s28 = scalar_lea.vmem %s905_s6, 256  ;;  %p703_p12 = scmp.lt.s32.totalorder %s905_s6, %s905_s6 }
  0x33   : > { %p696_p5 = scmp.ne.s32.totalorder %s905_s6, %s695_s28  ;;  %p704_p0 = scmp.lt.s32.totalorder %s695_s28, %s695_s28 }
  0x35   : > { %p698_p7 = pnand %p696_p5, %p656_p13  ;;  %p705_p2 = por %p704_p0, %p703_p12 }
  0x37   : > { %p699_p9 = pneg %p698_p7 }
  0x39   : > { %p706_p1 = pnand %p705_p2, %p699_p9 }
  0x3b   : > { %709 = shalt.err (!%p706_p1)
}
  0x3c   : > { %593 = dma.hbm_to_vmem [thread:$0]  (!%p901_p11), %s1096_s3, 256, %s905_s6, [#allocation6], %s814_s15, %s814_s15, %s815_s16  }
  0x3d   : > { %s960_s14 = sadd.s32 1, %s810_s21   ;;  %s29_s29 = sadd.s32 1, %s806_s20 }
  0x3e   : > { %s26_s17 = ssub.s32 %s810_s21, %s960_s14  ;;  %p36_p13 = scmp.ne.s32.totalorder %s806_s20, %s802_s19 }
  0x3f   : > { %p27_p6 = scmp.eq.s32.totalorder %s26_s17, 0  ;;  %p37_p10 = scmp.eq.s32.totalorder %s810_s21, 0 }
  0x40   : > { %p1106_p3 = scmp.eq.s32.totalorder %s871_s22, 1  ;;  %p604_p7 = scmp.lt.s32.totalorder %s810_s21, 2 }
  0x41   : > { %s976_s27 = scalar_select %p27_p6, %s806_s20, %s29_s29  }
  0x42   : > { %p970_p5 = por %p1106_p3, %p36_p13  ;;  %p38_p9 = por %p37_p10, %p36_p13 }
  0x43   : > { %s208_s30 = sand.u32 1, %s806_s20   ;;  %s535_s6 = sshll.u32 %s810_s21, 7 }
  0x44   : > { %s1107_s23 = scalar_select %p970_p5, 1, 0 }
  0x45   : > { %s534_s7 = sshll.u32 %s208_s30, 3  ;;  %s983_s8 = scalar_lea.hbm %s1093_s0, %s535_s6 }
  0x46   : > { %s212_s9 = scalar_lea.vmem [#allocation2], %s534_s7  ;;  %p987_p11 = pnand %p604_p7, %p38_p9 }
  0x47   : > { %s219_s10 = sshll.u32 %s212_s9, 4  ;;  %s209_s28 = scalar_lea.sflag [#allocation3], %s208_s30  ;;  %s985_s10 = int_to_ptr.vmem [resolvable:$true] %s219_s10 }
  0x48   : > { %s710_s12 = scalar_lea.hbm %s983_s8, 128  ;;  %p712_p0 = pneg %p987_p11 }
  0x49   : > { %p711_p12 = scmp.ne.s32.totalorder %s983_s8, %s710_s12  ;;  %s715_s17 = scalar_lea.hbm %s1093_s0, 256 }
  0x4a   : > { %p716_p13 = scmp.lt.u32.totalorder %s983_s8, %s1093_s0  ;;  %p717_p6 = scmp.lt.u32.totalorder %s715_s17, %s710_s12 }
  0x4b   : > { %p713_p2 = pnand %p712_p0, %p711_p12  ;;  %p719_p3 = scmp.lt.u32.totalorder %s710_s12, %s983_s8 }
  0x4c   : > { %p718_p10 = por %p717_p6, %p716_p13 }
  0x4d   : > { %p714_p1 = pneg %p713_p2 }
  0x4e   : > { %p720_p7 = por %p719_p3, %p718_p10 }
  0x50   : > { %p721_p9 = pnand %p720_p7, %p714_p1 }
  0x52   : > { %724 = shalt.err (!%p721_p9)
}
  0x53   : > { %s725_s30 = scalar_lea.vmem %s985_s10, 128  ;;  %s816_s15 = smov [#allocation2]  }
  0x54   : > { %p726_p12 = scmp.ne.s32.totalorder %s985_s10, %s725_s30  ;;  %s730_s16 = sshll.u32 %s816_s15, 4  ;;  %s731_s16 = int_to_ptr.vmem [resolvable:$false] %s730_s16 }
  0x55   : > { %s732_s9 = scalar_lea.vmem %s731_s16, 256  ;;  %p733_p4 = scmp.lt.s32.totalorder %s985_s10, %s731_s16 }
  0x56   : > { %p728_p2 = pnand %p726_p12, %p712_p0  ;;  %p734_p13 = scmp.lt.s32.totalorder %s732_s9, %s725_s30 }
  0x58   : > { %p729_p5 = pneg %p728_p2  ;;  %p735_p6 = por %p734_p13, %p733_p4 }
  0x5a   : > { %p736_p10 = pnand %p735_p6, %p729_p5 }
  0x5c   : > { %739 = shalt.err (!%p736_p10)
}
  0x5d   : > { %597 = dma.hbm_to_vmem [thread:$0]  (!%p987_p11), %s983_s8, 128, %s985_s10, %s209_s28  }
  0x5e   : > { %228 = sbr.rel (%p890_p8) target bundleno = 885 (0x375), region = 40  ;;  %s1019_s12 = sand.u32 (!%p890_p8), 1, %s802_s19  }
  0x5f   : > { %s537_s13 = sshll.u32 (!%p890_p8), %s1019_s12, 3  ;;  %s231_s29 = scalar_lea.sflag (!%p890_p8), [#allocation3], %s1019_s12 }
  0x60   : > { %s234_s17 = scalar_lea.vmem (!%p890_p8), [#allocation2], %s537_s13  ;;  %p1109_p4 = scmp.ne.s32.totalorder (!%p890_p8), %s1102_s24, 0 }
  0x65   : > { %785 = dma.done.wait (%p1109_p4), %s231_s29, 128  }
  0x66   : > { %787 = vsyncadd (%p1109_p4), %s231_s29, 4294967168  ;;  %p1110_p5 = scmp.eq.s32.totalorder %s871_s22, 0 }
  0x68   : > { %789 = dma.done.wait (%p1110_p5), [#allocation6], 512   ;;  %p1111_p8 = pmov %p1110_p5 }
  0x69   : > { %v817_v0 = vmov 0.0   ;;  %vm818_vm0 = vmmov 0   ;;  %v646_v1 = vld [vmem:[#allocation5] sm:$0xff]   ;;  %v647_v2 = vld [vmem:[#allocation5 + $0x8] sm:$0xff]   ;;  %v274_v3 = vld [vmem:[%s234_s17] sm:$0xff]  ;;  %vm295_vm1 = vcmask 261120  }
  0x6a   : > { %791 = vsyncadd (%p1111_p8), [#allocation6], 4294966784  ;;  %559 = vmatprep.subr.bf16.mxu0 %v817_v0  ;;  %563 = vmatprep.mubr.msk.bf16.mxu0 %vm818_vm0, %v817_v0  ;;  %v275_v4 = vpack.c.bf16 %v274_v3, %v274_v3  ;;  %v541_v5 = vld [vmem:[%s1095_s2] ss:$0 sm:$0xff]  ;;  %v649_v23 = vld [vmem:[#allocation7 + $0x8] sm:$0xff]   ;;  %s550_s11 = sshll.u32 %s871_s22, 7 }
  0x6b   : > { %567 = vmatprep.subr.bf16.mxu1 %v817_v0  ;;  %571 = vmatprep.mubr.msk.bf16.mxu1 %vm818_vm0, %v817_v0  ;;  %v648_v22 = vld [vmem:[#allocation7] sm:$0xff]   ;;  %s268_s28 = scalar_lea.vmem [#allocation8], %s537_s13  ;;  %s1049_s15 = scalar_lea.hbm %s1098_s5, %s550_s11 }
  0x6c   : > { %560 = vmatpush3.bf16.msra.mxu0 %v646_v1  ;;  %568 = vmatpush3.bf16.msra.mxu1 %v648_v22  ;;  %v545_v30 = vld [vmem:[%s1097_s4] ss:$0 sm:$0xff]  ;;  %s440_s7 = sshll.u32 %s268_s28, 4  ;;  %s427_s22 = scalar_lea.sflag [#allocation4], %s1019_s12  ;;  %s1051_s7 = int_to_ptr.vmem [resolvable:$true] %s440_s7 }
  0x6d   : > { %561 = vmatprep.subr.bf16.mxu0 %v817_v0  ;;  %569 = vmatprep.subr.bf16.mxu1 %v817_v0  ;;  %s740_s16 = scalar_lea.vmem %s1051_s7, 128  ;;  %p1112_p0 = scmp.ne.s32.totalorder %s1107_s23, 0 }
  0x6e   : > { %p741_p11 = scmp.ne.s32.totalorder %s1051_s7, %s740_s16  ;;  %s819_s9 = smov [#allocation8]  }
  0x6f   : > { %s744_s13 = sshll.u32 %s819_s9, 4  ;;  %s745_s13 = int_to_ptr.vmem [resolvable:$false] %s744_s13 }
  0x70   : > { %562 = vmatpush3.bf16.msra.mxu0 %v647_v2  ;;  %570 = vmatpush3.bf16.msra.mxu1 %v649_v23  ;;  %p742_p1 = pnand %p741_p11, %p1112_p0  ;;  %s746_s29 = scalar_lea.vmem %s745_s13, 256 }
  0x71   : > { %p747_p7 = scmp.lt.s32.totalorder %s1051_s7, %s745_s13  ;;  %p748_p9 = scmp.lt.s32.totalorder %s746_s29, %s740_s16 }
  0x72   : > { %p743_p3 = pneg %p742_p1 }
  0x73   : > { %564 = vmatmul.mubr.msk.bf16.vlgmr.msra.gmra.mrb[0].mxu0 %vm295_vm1, %v275_v4  ;;  %p749_p12 = por %p748_p9, %p747_p7 }
  0x75   : > { %p750_p2 = pnand %p749_p12, %p743_p3 }
 0x146   : > { %v333_v6 = vpop.f32.mrb[0].mxu0 }
 0x147   : > { %v334_v7 = vadd.f32 %v541_v5, %v333_v6  ;;  %v565_v8 = vpop.f32.mrb[1].mxu0 }
 0x148   : > { %v336_v9 = vpop.f32.mrb[2].mxu0 }
 0x149   : > { %v340_v10 = vmul.f32 0.70710677, %v334_v7  ;;  %v566_v11 = vpop.f32.mrb[3].mxu0  ;;  %v339_v13 = vmul.f32 0.5, %v334_v7 }
 0x14b   : > { %650 = verf.f32 %v340_v10 }
 0x155   : > { %v651_v12 = vpop.eup %650 }
 0x156   : > { %v342_v14 = vadd.f32 1.0, %v651_v12 }
 0x158   : > { %v343_v15 = vmul.f32 %v342_v14, %v339_v13 }
 0x15a   : > { %v344_v16 = vsel %vm295_vm1, %v343_v15, 0.0 }
 0x15b   : > { %345 = vadd.xlane.f32.xlu0 %v344_v16 }
 0x1e8   : > { %v346_v17 = vpop.xlane.xlu0 %345 }
 0x1e9   : > { %v348_v18 = vmul.f32 0.03125, %v346_v17 }
 0x1eb   : > { %v349_v19 = vsub.f32 %v343_v15, %v348_v18 }
 0x1ed   : > { %v350_v20 = vmul.f32 %v349_v19, %v349_v19 }
 0x1ef   : > { %v351_v21 = vsel %vm295_vm1, %v350_v20, 0.0 }
 0x1f0   : > { %352 = vadd.xlane.f32.xlu0 %v351_v21 }
 0x27d   : > { %v353_v24 = vpop.xlane.xlu0 %352 }
 0x27e   : > { %v354_v25 = vmul.f32 0.03125, %v353_v24 }
 0x280   : > { %v355_v26 = vadd.f32 1e-05, %v354_v25 }
 0x282   : > { %652 = vrsqrt.f32 %v355_v26 }
 0x28c   : > { %v653_v27 = vpop.eup %652 }
 0x28d   : > { %v357_v28 = vmul.f32 %v653_v27, %v349_v19 }
 0x28f   : > { %v362_v29 = vpack.c.bf16 %v357_v28, %v357_v28 }
 0x291   : > { %572 = vmatmul.mubr.msk.bf16.vlgmr.msra.gmra.mrb[0].mxu1 %vm295_vm1, %v362_v29 }
 0x364   : > { %v419_v31 = vpop.f32.mrb[0].mxu1 }
 0x365   : > { %v420_v32 = vadd.f32 %v545_v30, %v419_v31  ;;  %v573_v33 = vpop.f32.mrb[1].mxu1 }
 0x366   : > { %v422_v34 = vpop.f32.mrb[2].mxu1 }
 0x367   : > { %425 = vst [vmem:[%s268_s28] sm:$0xff] %v420_v32  ;;  %v574_v35 = vpop.f32.mrb[3].mxu1 }
 0x368   : > { %753 = shalt.err (!%p750_p2)
}
 0x369   : > { %s754_s12 = scalar_lea.hbm %s1049_s15, 128  ;;  %s758_s26 = scalar_lea.hbm %s1098_s5, 256 }
 0x36a   : > { %p755_p13 = scmp.ne.s32.totalorder %s1049_s15, %s754_s12  ;;  %p759_p4 = scmp.lt.u32.totalorder %s1049_s15, %s1098_s5 }
 0x36b   : > { %p760_p5 = scmp.lt.u32.totalorder %s758_s26, %s754_s12  ;;  %p762_p11 = scmp.lt.u32.totalorder %s754_s12, %s1049_s15 }
 0x36c   : > { %p756_p6 = pnand %p755_p13, %p1112_p0 }
 0x36d   : > { %p761_p8 = por %p760_p5, %p759_p4 }
 0x36e   : > { %p757_p10 = pneg %p756_p6 }
 0x36f   : > { %p763_p1 = por %p762_p11, %p761_p8 }
 0x371   : > { %p764_p3 = pnand %p763_p1, %p757_p10 }
 0x373   : > { %767 = shalt.err (!%p764_p3)
}
 0x374   : > { %585 = dma.vmem_to_hbm [thread:$0]  (%p1112_p0), %s1051_s7, 128, %s1049_s15, %s427_s22  }
 0x375 PF: > { %s452_s11 = sand.u32 1, %s798_s18   ;;  %p1113_p7 = scmp.ne.s32.totalorder %s1103_s25, 0 }
 0x376   : > { %p1114_p9 = scmp.ge.s32.totalorder %s810_s21, 2  ;;  %s453_s28 = scalar_lea.sflag [#allocation4], %s452_s11 }
 0x378   : > { %p599_p12 = pnand %p1114_p9, %p1113_p7 }
 0x37a   : > { %793 = dma.done.wait (!%p599_p12), %s453_s28, 128  }
 0x37b   : > { %795 = vsyncadd (!%p599_p12), %s453_s28, 4294967168  ;;  %p19_p2 = scmp.ge.s32.totalorder %s960_s14, 4   ;;  %s1115_s18 = smov %s802_s19 }
 0x37c   : > { %s1116_s19 = smov %s806_s20  ;;  %s1117_s20 = smov %s976_s27 }
 0x37d   : > { %s1118_s21 = smov %s960_s14  ;;  %21 = sbr.rel (!%p19_p2) target bundleno = 6 (0x6), region = 93 }
 0x384   :  { %458 = vsyncpa [#allocation3], 1 }
 0x385   :  { %460 = vsyncpa [#allocation3 + $0x1], 1 }
 0x386   :  { %461 = vsyncpa [#allocation6], 1 }
 0x387   :  { %462 = vsyncpa [#allocation4], 1 }
 0x388   :  { %464 = vsyncpa [#allocation4 + $0x1], 1 }

</bundles_post_ra>
